<compile_context>
chip_gen: v5e
topology: v5e:2x2
jax: 0.10.0
libtpu: 0.0.40
codegen_flags: <defaults>
</compile_context>

<pallas_src>
import functools

import jax
import jax.numpy as jnp
import numpy as np
from jax import lax
from jax.experimental import pallas as pl
from jax.experimental.pallas import tpu as pltpu


# --------------------------------------------------------------------------- trace-time helpers

def _fold_bn_stacked(weight, gamma, beta, mean, var, eps):
    """Fold eval-mode BN into the conv weight (exact) and emit it tap-stacked.

    weight: (Cout, Cin, 3, 3) OIHW.
    Returns w_stacked (Cout, 9*Cin) with column index (kh*3+kw)*Cin + cin, and bias (Cout, 1).
    """
    cout, cin = weight.shape[0], weight.shape[1]
    scale = gamma / jnp.sqrt(var + eps)                      # (Cout,)
    bias = beta - mean * scale                               # (Cout,)
    w_s = weight * scale[:, None, None, None]                # (Cout, Cin, 3, 3)
    w_stacked = jnp.transpose(w_s, (0, 2, 3, 1)).reshape(cout, 9 * cin)
    return w_stacked, bias.reshape(cout, 1)


def _border_masks(H, W, b_tile):
    """(8, b_tile*H*W) f32 0/1 masks for the 8 non-center taps (lane order: [image, h, w])."""
    pos = np.arange(H * W)
    row, col = pos // W, pos % W
    rows = []
    for dh in (-1, 0, 1):
        for dw in (-1, 0, 1):
            if dh == 0 and dw == 0:
                continue
            m = np.ones(H * W, dtype=np.float32)
            if dh == -1:
                m *= (row >= 1)
            if dh == 1:
                m *= (row <= H - 2)
            if dw == -1:
                m *= (col >= 1)
            if dw == 1:
                m *= (col <= W - 2)
            rows.append(m)
    m8 = np.stack(rows, axis=0).astype(np.float32)           # (8, H*W)
    return jnp.asarray(np.tile(m8, (1, b_tile)))              # (8, b_tile*H*W)


def _subsample_matrix(H, W, stride, b_tile):
    """0/1 selection matrix S (b_tile*H*W, b_tile*Ho*Wo): dense conv output -> strided output."""
    Ho = (H - 1) // stride + 1
    Wo = (W - 1) // stride + 1
    L, Lo = b_tile * H * W, b_tile * Ho * Wo
    S = np.zeros((L, Lo), dtype=np.float32)
    for b in range(b_tile):
        for ho in range(Ho):
            for wo in range(Wo):
                S[b * H * W + ho * stride * W + wo * stride,
                  b * Ho * Wo + ho * Wo + wo] = 1.0
    return jnp.asarray(S)


def _choose_b_tile(N, hw_in, hw_out, target_lanes=2048):
    """Images packed per grid step: widest tile <= target_lanes whose blocks stay lane-aligned.

    For small N this packs the whole batch into one fat step (overhead-bound regime); for
    production N / HW it naturally falls back to 1 image per step, restoring >=2 steps per core.
    """
    divisors = [b for b in range(1, N + 1) if N % b == 0]
    valid = [b for b in divisors
             if N // b == 1 or ((b * hw_in) % 128 == 0 and (b * hw_out) % 128 == 0)]
    fitting = [b for b in valid if b * hw_in <= target_lanes]
    return max(fitting) if fitting else min(valid)


# --------------------------------------------------------------------------------------- kernels

def _conv3x3_stacked(x, masks, w_stacked, W_img):
    """3x3 'same' conv as ONE matmul: stack the 9 shifted taps along the contraction axis.

    x: (Cin, L) VMEM-resident, L = b_tile*H*W packed along lanes ([image, h, w] order).
    masks: (8, L) 0/1 border masks for the 8 non-center taps (same loop order).
    w_stacked: (Cout, 9*Cin), BN scale folded in.  Returns (Cout, L) f32.
    """
    L = x.shape[-1]
    taps = []
    k_nz = 0
    for dh in (-1, 0, 1):
        for dw in (-1, 0, 1):
            shift = dh * W_img + dw
            if shift == 0:
                taps.append(x)
            else:
                # tap[:, m] = x[:, m + shift]; wraps (image borders / image boundaries) masked to 0.
                t = pltpu.roll(x, shift=(-shift) % L, axis=1)
                taps.append(t * masks[k_nz:k_nz + 1, :])
                k_nz += 1
    rhs = jnp.concatenate(taps, axis=0)                      # (9*Cin, L)
    return jnp.dot(w_stacked, rhs, preferred_element_type=jnp.float32)


def _fused_s1_kernel(x_ref, m_ref, wa_ref, ba_ref, wb_ref, bb_ref, o_ref, *, W):
    """stride==1: conv3x3+BN+ReLU -> conv3x3+BN for b_tile packed images, fully in VMEM."""
    masks = m_ref[...]
    h = jnp.maximum(
        _conv3x3_stacked(x_ref[...], masks, wa_ref[...], W) + ba_ref[...], 0.0)
    y = _conv3x3_stacked(h, masks, wb_ref[...], W) + bb_ref[...]
    o_ref[...] = y.astype(o_ref.dtype)


def _fused_strided_kernel(x_ref, ma_ref, sel_ref, mb_ref, wa_ref, ba_ref, wb_ref, bb_ref,
                          o_ref, *, W, Wo):
    """stride>1: dense conv-a in VMEM, in-register subsample (0/1 selection matmul), conv-b."""
    a = jnp.maximum(
        _conv3x3_stacked(x_ref[...], ma_ref[...], wa_ref[...], W) + ba_ref[...], 0.0)
    h = jnp.dot(a, sel_ref[...], preferred_element_type=jnp.float32)   # (Cout, Lo)
    y = _conv3x3_stacked(h, mb_ref[...], wb_ref[...], Wo) + bb_ref[...]
    o_ref[...] = y.astype(o_ref.dtype)


# ---------------------------------------------------------------------------------- call builders

def _compiler_params():
    return pltpu.CompilerParams(dimension_semantics=("parallel",),
                                vmem_limit_bytes=32 * 1024 * 1024)


def _fused_s1_call(x_packed, masks, wa, ba, wb, bb, *, H, W, b_tile):
    cin_p, n_lanes = x_packed.shape
    cout = wa.shape[0]
    L = b_tile * H * W
    T = n_lanes // L
    flops = 2 * n_lanes * cout * (wa.shape[1] + wb.shape[1])
    bytes_acc = 4 * (x_packed.size + cout * n_lanes + wa.size + wb.size + masks.size)
    return pl.pallas_call(
        functools.partial(_fused_s1_kernel, W=W),
        out_shape=jax.ShapeDtypeStruct((cout, n_lanes), jnp.float32),
        grid_spec=pltpu.PrefetchScalarGridSpec(
            num_scalar_prefetch=0,
            grid=(T,),
            in_specs=[
                pl.BlockSpec((cin_p, L), lambda t: (0, t)),           # packed images
                pl.BlockSpec((8, L), lambda t: (0, 0)),               # border masks
                pl.BlockSpec((cout, wa.shape[1]), lambda t: (0, 0)),  # conv-a taps (BN folded)
                pl.BlockSpec((cout, 1), lambda t: (0, 0)),            # conv-a bias
                pl.BlockSpec((cout, wb.shape[1]), lambda t: (0, 0)),  # conv-b taps (BN folded)
                pl.BlockSpec((cout, 1), lambda t: (0, 0)),            # conv-b bias
            ],
            out_specs=pl.BlockSpec((cout, L), lambda t: (0, t)),
        ),
        compiler_params=_compiler_params(),
        cost_estimate=pl.CostEstimate(flops=int(flops), transcendentals=0,
                                      bytes_accessed=int(bytes_acc)),
    )(x_packed, masks, wa, ba, wb, bb)


def _fused_strided_call(x_packed, masks_a, sel, masks_b, wa, ba, wb, bb, *,
                        H, W, Ho, Wo, b_tile):
    cin_p, n_lanes = x_packed.shape
    cout = wa.shape[0]
    L = b_tile * H * W
    Lo = b_tile * Ho * Wo
    T = n_lanes // L
    n_out = T * Lo
    flops = 2 * cout * (n_lanes * wa.shape[1] + T * L * Lo + n_out * wb.shape[1])
    bytes_acc = 4 * (x_packed.size + cout * n_out + wa.size + wb.size
                     + masks_a.size + masks_b.size + sel.size)
    return pl.pallas_call(
        functools.partial(_fused_strided_kernel, W=W, Wo=Wo),
        out_shape=jax.ShapeDtypeStruct((cout, n_out), jnp.float32),
        grid_spec=pltpu.PrefetchScalarGridSpec(
            num_scalar_prefetch=0,
            grid=(T,),
            in_specs=[
                pl.BlockSpec((cin_p, L), lambda t: (0, t)),           # packed images
                pl.BlockSpec((8, L), lambda t: (0, 0)),               # conv-a border masks
                pl.BlockSpec((L, Lo), lambda t: (0, 0)),              # subsample selection matrix
                pl.BlockSpec((8, Lo), lambda t: (0, 0)),              # conv-b border masks
                pl.BlockSpec((cout, wa.shape[1]), lambda t: (0, 0)),  # conv-a taps (BN folded)
                pl.BlockSpec((cout, 1), lambda t: (0, 0)),            # conv-a bias
                pl.BlockSpec((cout, wb.shape[1]), lambda t: (0, 0)),  # conv-b taps (BN folded)
                pl.BlockSpec((cout, 1), lambda t: (0, 0)),            # conv-b bias
            ],
            out_specs=pl.BlockSpec((cout, Lo), lambda t: (0, t)),
        ),
        compiler_params=_compiler_params(),
        cost_estimate=pl.CostEstimate(flops=int(flops), transcendentals=0,
                                      bytes_accessed=int(bytes_acc)),
    )(x_packed, masks_a, sel, masks_b, wa, ba, wb, bb)


# ----------------------------------------------------------------------------------- public entry

def basic_transform_forward(x_nchw,
                            a_weight, a_gamma, a_beta, a_mean, a_var,
                            b_weight, b_gamma, b_beta, b_mean, b_var,
                            eps=1e-5, stride=1):
    """x_nchw: (N, Cin, H, W) f32. Weights in PyTorch OIHW layout. Eval-mode BN."""
    N, Cin, H, W = x_nchw.shape
    Cout = a_weight.shape[0]
    Ho = (H - 1) // stride + 1
    Wo = (W - 1) // stride + 1

    # Pad Cin up to a multiple of 8 with zero channels (exact) for sublane-aligned tap stacking.
    cin_pad = (-Cin) % 8
    if cin_pad:
        x_nchw = jnp.pad(x_nchw, ((0, 0), (0, cin_pad), (0, 0), (0, 0)))
        a_weight = jnp.pad(a_weight, ((0, 0), (0, cin_pad), (0, 0), (0, 0)))
    cin_p = Cin + cin_pad

    wa, ba = _fold_bn_stacked(a_weight, a_gamma, a_beta, a_mean, a_var, eps)
    wb, bb = _fold_bn_stacked(b_weight, b_gamma, b_beta, b_mean, b_var, eps)

    b_tile = _choose_b_tile(N, H * W, Ho * Wo)
    # Pack the batch along the lane axis: (Cin_p, N*H*W), lane order [image, h, w].
    x_packed = jnp.transpose(x_nchw, (1, 0, 2, 3)).reshape(cin_p, N * H * W)

    # TODO(synk): for production RegNet widths add an H*W tile axis with a one-row halo so the
    # stacked RHS (~9x the feature map) stays within v7x's 64 MiB VMEM; unnecessary at these sizes.
    if stride == 1:
        masks = _border_masks(H, W, b_tile)
        y = _fused_s1_call(x_packed, masks, wa, ba, wb, bb, H=H, W=W, b_tile=b_tile)
    else:
        # Fully fused strided path: no HBM round trip for the intermediate feature map.
        # TODO(synk): the (H*W, Ho*Wo) selection matrix is O(HW^2) VMEM; swap for a dedicated
        # strided-gather kernel at production-size feature maps.
        masks_a = _border_masks(H, W, b_tile)
        masks_b = _border_masks(Ho, Wo, b_tile)
        sel = _subsample_matrix(H, W, stride, b_tile)
        y = _fused_strided_call(x_packed, masks_a, sel, masks_b, wa, ba, wb, bb,
                                H=H, W=W, Ho=Ho, Wo=Wo, b_tile=b_tile)

    return jnp.transpose(y.reshape(Cout, N, Ho, Wo), (1, 0, 2, 3))


# -------------------------------------------------------------------------------------- reference

def _reference_forward(x, a_w, a_g, a_b, a_m, a_v, b_w, b_g, b_b, b_m, b_v,
                       eps=1e-5, stride=1):
    """Plain-JAX reference of the same (eval-mode) forward."""
    def conv_bn(x, w, g, b, m, v, s, relu):
        y = lax.conv_general_dilated(
            x, w, window_strides=(s, s), padding=((1, 1), (1, 1)),
            dimension_numbers=("NCHW", "OIHW", "NCHW"))
        scale = (g / jnp.sqrt(v + eps)).reshape(1, -1, 1, 1)
        bias = (b - m * (g / jnp.sqrt(v + eps))).reshape(1, -1, 1, 1)
        y = y * scale + bias
        return jnp.maximum(y, 0.0) if relu else y

    h = conv_bn(x, a_w, a_g, a_b, a_m, a_v, stride, True)
    return conv_bn(h, b_w, b_g, b_b, b_m, b_v, 1, False)


if __name__ == "__main__":
    # Small shapes consistent with the module: batch=2, w_in=4, w_out=16, spatial 16x16.
    N, Cin, Cout, H, W = 2, 4, 16, 16, 16
    eps = 1e-5

    key = jax.random.PRNGKey(0)
    ks = jax.random.split(key, 11)

    x = jax.random.normal(ks[0], (N, Cin, H, W), dtype=jnp.float32)
    a_w = jax.random.normal(ks[1], (Cout, Cin, 3, 3), dtype=jnp.float32) * 0.1
    a_g = 1.0 + 0.1 * jax.random.normal(ks[2], (Cout,), dtype=jnp.float32)
    a_b = 0.1 * jax.random.normal(ks[3], (Cout,), dtype=jnp.float32)
    a_m = 0.1 * jax.random.normal(ks[4], (Cout,), dtype=jnp.float32)
    a_v = jax.random.uniform(ks[5], (Cout,), dtype=jnp.float32, minval=0.5, maxval=1.5)
    b_w = jax.random.normal(ks[6], (Cout, Cout, 3, 3), dtype=jnp.float32) * 0.1
    b_g = 1.0 + 0.1 * jax.random.normal(ks[7], (Cout,), dtype=jnp.float32)
    b_b = 0.1 * jax.random.normal(ks[8], (Cout,), dtype=jnp.float32)
    b_m = 0.1 * jax.random.normal(ks[9], (Cout,), dtype=jnp.float32)
    b_v = jax.random.uniform(ks[10], (Cout,), dtype=jnp.float32, minval=0.5, maxval=1.5)

    # stride = 1 : fully fused single kernel.
    fwd1 = jax.jit(functools.partial(basic_transform_forward, eps=eps, stride=1))
    y1 = fwd1(x, a_w, a_g, a_b, a_m, a_v, b_w, b_g, b_b, b_m, b_v)
    jax.block_until_ready(y1)
    y1_ref = _reference_forward(x, a_w, a_g, a_b, a_m, a_v, b_w, b_g, b_b, b_m, b_v,
                                eps=eps, stride=1)
    np.testing.assert_allclose(np.asarray(y1), np.asarray(y1_ref), rtol=1e-3, atol=1e-3)

    # stride = 2 : fused strided path (dense conv-a + in-VMEM subsample + conv-b).
    fwd2 = jax.jit(functools.partial(basic_transform_forward, eps=eps, stride=2))
    y2 = fwd2(x, a_w, a_g, a_b, a_m, a_v, b_w, b_g, b_b, b_m, b_v)
    jax.block_until_ready(y2)
    y2_ref = _reference_forward(x, a_w, a_g, a_b, a_m, a_v, b_w, b_g, b_b, b_m, b_v,
                                eps=eps, stride=2)
    np.testing.assert_allclose(np.asarray(y2), np.asarray(y2_ref), rtol=1e-3, atol=1e-3)

    print("KERNEL_OK")
</pallas_src>

<mosaic_0001>
module attributes {stable_mosaic.version = 11 : i64} {
  func.func @_fused_s1_kernel(%arg0: i32, %arg1: memref<8x512xf32, #tpu.memory_space<vmem>>, %arg2: memref<8x512xf32, #tpu.memory_space<vmem>>, %arg3: memref<16x72xf32, #tpu.memory_space<vmem>>, %arg4: memref<16x1xf32, #tpu.memory_space<vmem>>, %arg5: memref<16x144xf32, #tpu.memory_space<vmem>>, %arg6: memref<16x1xf32, #tpu.memory_space<vmem>>, %arg7: memref<16x512xf32, #tpu.memory_space<vmem>>) attributes {dimension_semantics = [#tpu.dimension_semantics<parallel>], iteration_bounds = array<i64: 1>, scalar_prefetch = 0 : i64, scratch_operands = 0 : i64, tpu.core_type = #tpu.core_type<tc>, window_params = [{transform_indices = @transform_0, window_bounds = array<i64: 8, 512>}, {pipeline_mode = #tpu.pipeline_mode<synchronous>, transform_indices = @transform_1, window_bounds = array<i64: 8, 512>}, {pipeline_mode = #tpu.pipeline_mode<synchronous>, transform_indices = @transform_2, window_bounds = array<i64: 16, 72>}, {pipeline_mode = #tpu.pipeline_mode<synchronous>, transform_indices = @transform_3, window_bounds = array<i64: 16, 1>}, {pipeline_mode = #tpu.pipeline_mode<synchronous>, transform_indices = @transform_4, window_bounds = array<i64: 16, 144>}, {pipeline_mode = #tpu.pipeline_mode<synchronous>, transform_indices = @transform_5, window_bounds = array<i64: 16, 1>}, {transform_indices = @transform_6, window_bounds = array<i64: 16, 512>}]} {
    %c0 = arith.constant 0 : index
    %c0_0 = arith.constant 0 : index
    %0 = vector.load %arg2[%c0, %c0_0] : memref<8x512xf32, #tpu.memory_space<vmem>>, vector<8x512xf32>
    %c0_1 = arith.constant 0 : index
    %c0_2 = arith.constant 0 : index
    %1 = vector.load %arg1[%c0_1, %c0_2] : memref<8x512xf32, #tpu.memory_space<vmem>>, vector<8x512xf32>
    %c0_3 = arith.constant 0 : index
    %c0_4 = arith.constant 0 : index
    %2 = vector.load %arg3[%c0_3, %c0_4] : memref<16x72xf32, #tpu.memory_space<vmem>>, vector<16x72xf32>
    %c17_i32 = arith.constant 17 : i32
    %3 = tpu.dynamic_rotate %1 by %c17_i32 dim 1 : vector<8x512xf32>, i32 -> vector<8x512xf32>
    %4 = vector.extract_strided_slice %0 {offsets = [0, 0], sizes = [1, 512], strides = [1, 1]} : vector<8x512xf32> to vector<1x512xf32>
    %5 = vector.broadcast %4 : vector<1x512xf32> to vector<8x512xf32>
    %6 = arith.mulf %3, %5 : vector<8x512xf32>
    %c16_i32 = arith.constant 16 : i32
    %7 = tpu.dynamic_rotate %1 by %c16_i32 dim 1 : vector<8x512xf32>, i32 -> vector<8x512xf32>
    %8 = vector.extract_strided_slice %0 {offsets = [1, 0], sizes = [1, 512], strides = [1, 1]} : vector<8x512xf32> to vector<1x512xf32>
    %9 = vector.broadcast %8 : vector<1x512xf32> to vector<8x512xf32>
    %10 = arith.mulf %7, %9 : vector<8x512xf32>
    %c15_i32 = arith.constant 15 : i32
    %11 = tpu.dynamic_rotate %1 by %c15_i32 dim 1 : vector<8x512xf32>, i32 -> vector<8x512xf32>
    %12 = vector.extract_strided_slice %0 {offsets = [2, 0], sizes = [1, 512], strides = [1, 1]} : vector<8x512xf32> to vector<1x512xf32>
    %13 = vector.broadcast %12 : vector<1x512xf32> to vector<8x512xf32>
    %14 = arith.mulf %11, %13 : vector<8x512xf32>
    %c1_i32 = arith.constant 1 : i32
    %15 = tpu.dynamic_rotate %1 by %c1_i32 dim 1 : vector<8x512xf32>, i32 -> vector<8x512xf32>
    %16 = vector.extract_strided_slice %0 {offsets = [3, 0], sizes = [1, 512], strides = [1, 1]} : vector<8x512xf32> to vector<1x512xf32>
    %17 = vector.broadcast %16 : vector<1x512xf32> to vector<8x512xf32>
    %18 = arith.mulf %15, %17 : vector<8x512xf32>
    %c511_i32 = arith.constant 511 : i32
    %19 = tpu.dynamic_rotate %1 by %c511_i32 dim 1 : vector<8x512xf32>, i32 -> vector<8x512xf32>
    %20 = vector.extract_strided_slice %0 {offsets = [4, 0], sizes = [1, 512], strides = [1, 1]} : vector<8x512xf32> to vector<1x512xf32>
    %21 = vector.broadcast %20 : vector<1x512xf32> to vector<8x512xf32>
    %22 = arith.mulf %19, %21 : vector<8x512xf32>
    %c497_i32 = arith.constant 497 : i32
    %23 = tpu.dynamic_rotate %1 by %c497_i32 dim 1 : vector<8x512xf32>, i32 -> vector<8x512xf32>
    %24 = vector.extract_strided_slice %0 {offsets = [5, 0], sizes = [1, 512], strides = [1, 1]} : vector<8x512xf32> to vector<1x512xf32>
    %25 = vector.broadcast %24 : vector<1x512xf32> to vector<8x512xf32>
    %26 = arith.mulf %23, %25 : vector<8x512xf32>
    %c496_i32 = arith.constant 496 : i32
    %27 = tpu.dynamic_rotate %1 by %c496_i32 dim 1 : vector<8x512xf32>, i32 -> vector<8x512xf32>
    %28 = vector.extract_strided_slice %0 {offsets = [6, 0], sizes = [1, 512], strides = [1, 1]} : vector<8x512xf32> to vector<1x512xf32>
    %29 = vector.broadcast %28 : vector<1x512xf32> to vector<8x512xf32>
    %30 = arith.mulf %27, %29 : vector<8x512xf32>
    %c495_i32 = arith.constant 495 : i32
    %31 = tpu.dynamic_rotate %1 by %c495_i32 dim 1 : vector<8x512xf32>, i32 -> vector<8x512xf32>
    %32 = vector.extract_strided_slice %0 {offsets = [7, 0], sizes = [1, 512], strides = [1, 1]} : vector<8x512xf32> to vector<1x512xf32>
    %33 = vector.broadcast %32 : vector<1x512xf32> to vector<8x512xf32>
    %34 = arith.mulf %31, %33 : vector<8x512xf32>
    %35 = tpu.concatenate %6, %10, %14, %18, %1, %22, %26, %30, %34 in 0 : vector<8x512xf32>, vector<8x512xf32>, vector<8x512xf32>, vector<8x512xf32>, vector<8x512xf32>, vector<8x512xf32>, vector<8x512xf32>, vector<8x512xf32>, vector<8x512xf32> -> vector<72x512xf32>
    %cst = arith.constant dense<0.000000e+00> : vector<16x512xf32>
    %36 = tpu.matmul %2, %35, %cst {dimension_numbers = #tpu.dot_dimension_numbers<[1], [0], [0], [1], [0, 0, 1, 1], [], []>} : vector<16x72xf32>, vector<72x512xf32>, vector<16x512xf32> -> vector<16x512xf32>
    %c0_5 = arith.constant 0 : index
    %c0_6 = arith.constant 0 : index
    %37 = vector.load %arg4[%c0_5, %c0_6] : memref<16x1xf32, #tpu.memory_space<vmem>>, vector<16x1xf32>
    %38 = vector.broadcast %37 : vector<16x1xf32> to vector<16x512xf32>
    %39 = arith.addf %36, %38 : vector<16x512xf32>
    %cst_7 = arith.constant 0.000000e+00 : f32
    %40 = vector.broadcast %cst_7 : f32 to vector<16x512xf32>
    %41 = arith.maximumf %39, %40 : vector<16x512xf32>
    %c0_8 = arith.constant 0 : index
    %c0_9 = arith.constant 0 : index
    %42 = vector.load %arg5[%c0_8, %c0_9] : memref<16x144xf32, #tpu.memory_space<vmem>>, vector<16x144xf32>
    %c17_i32_10 = arith.constant 17 : i32
    %43 = tpu.dynamic_rotate %41 by %c17_i32_10 dim 1 : vector<16x512xf32>, i32 -> vector<16x512xf32>
    %44 = vector.extract_strided_slice %0 {offsets = [0, 0], sizes = [1, 512], strides = [1, 1]} : vector<8x512xf32> to vector<1x512xf32>
    %45 = vector.broadcast %44 : vector<1x512xf32> to vector<16x512xf32>
    %46 = arith.mulf %43, %45 : vector<16x512xf32>
    %c16_i32_11 = arith.constant 16 : i32
    %47 = tpu.dynamic_rotate %41 by %c16_i32_11 dim 1 : vector<16x512xf32>, i32 -> vector<16x512xf32>
    %48 = vector.extract_strided_slice %0 {offsets = [1, 0], sizes = [1, 512], strides = [1, 1]} : vector<8x512xf32> to vector<1x512xf32>
    %49 = vector.broadcast %48 : vector<1x512xf32> to vector<16x512xf32>
    %50 = arith.mulf %47, %49 : vector<16x512xf32>
    %c15_i32_12 = arith.constant 15 : i32
    %51 = tpu.dynamic_rotate %41 by %c15_i32_12 dim 1 : vector<16x512xf32>, i32 -> vector<16x512xf32>
    %52 = vector.extract_strided_slice %0 {offsets = [2, 0], sizes = [1, 512], strides = [1, 1]} : vector<8x512xf32> to vector<1x512xf32>
    %53 = vector.broadcast %52 : vector<1x512xf32> to vector<16x512xf32>
    %54 = arith.mulf %51, %53 : vector<16x512xf32>
    %c1_i32_13 = arith.constant 1 : i32
    %55 = tpu.dynamic_rotate %41 by %c1_i32_13 dim 1 : vector<16x512xf32>, i32 -> vector<16x512xf32>
    %56 = vector.extract_strided_slice %0 {offsets = [3, 0], sizes = [1, 512], strides = [1, 1]} : vector<8x512xf32> to vector<1x512xf32>
    %57 = vector.broadcast %56 : vector<1x512xf32> to vector<16x512xf32>
    %58 = arith.mulf %55, %57 : vector<16x512xf32>
    %c511_i32_14 = arith.constant 511 : i32
    %59 = tpu.dynamic_rotate %41 by %c511_i32_14 dim 1 : vector<16x512xf32>, i32 -> vector<16x512xf32>
    %60 = vector.extract_strided_slice %0 {offsets = [4, 0], sizes = [1, 512], strides = [1, 1]} : vector<8x512xf32> to vector<1x512xf32>
    %61 = vector.broadcast %60 : vector<1x512xf32> to vector<16x512xf32>
    %62 = arith.mulf %59, %61 : vector<16x512xf32>
    %c497_i32_15 = arith.constant 497 : i32
    %63 = tpu.dynamic_rotate %41 by %c497_i32_15 dim 1 : vector<16x512xf32>, i32 -> vector<16x512xf32>
    %64 = vector.extract_strided_slice %0 {offsets = [5, 0], sizes = [1, 512], strides = [1, 1]} : vector<8x512xf32> to vector<1x512xf32>
    %65 = vector.broadcast %64 : vector<1x512xf32> to vector<16x512xf32>
    %66 = arith.mulf %63, %65 : vector<16x512xf32>
    %c496_i32_16 = arith.constant 496 : i32
    %67 = tpu.dynamic_rotate %41 by %c496_i32_16 dim 1 : vector<16x512xf32>, i32 -> vector<16x512xf32>
    %68 = vector.extract_strided_slice %0 {offsets = [6, 0], sizes = [1, 512], strides = [1, 1]} : vector<8x512xf32> to vector<1x512xf32>
    %69 = vector.broadcast %68 : vector<1x512xf32> to vector<16x512xf32>
    %70 = arith.mulf %67, %69 : vector<16x512xf32>
    %c495_i32_17 = arith.constant 495 : i32
    %71 = tpu.dynamic_rotate %41 by %c495_i32_17 dim 1 : vector<16x512xf32>, i32 -> vector<16x512xf32>
    %72 = vector.extract_strided_slice %0 {offsets = [7, 0], sizes = [1, 512], strides = [1, 1]} : vector<8x512xf32> to vector<1x512xf32>
    %73 = vector.broadcast %72 : vector<1x512xf32> to vector<16x512xf32>
    %74 = arith.mulf %71, %73 : vector<16x512xf32>
    %75 = tpu.concatenate %46, %50, %54, %58, %41, %62, %66, %70, %74 in 0 : vector<16x512xf32>, vector<16x512xf32>, vector<16x512xf32>, vector<16x512xf32>, vector<16x512xf32>, vector<16x512xf32>, vector<16x512xf32>, vector<16x512xf32>, vector<16x512xf32> -> vector<144x512xf32>
    %cst_18 = arith.constant dense<0.000000e+00> : vector<16x512xf32>
    %76 = tpu.matmul %42, %75, %cst_18 {dimension_numbers = #tpu.dot_dimension_numbers<[1], [0], [0], [1], [0, 0, 1, 1], [], []>} : vector<16x144xf32>, vector<144x512xf32>, vector<16x512xf32> -> vector<16x512xf32>
    %c0_19 = arith.constant 0 : index
    %c0_20 = arith.constant 0 : index
    %77 = vector.load %arg6[%c0_19, %c0_20] : memref<16x1xf32, #tpu.memory_space<vmem>>, vector<16x1xf32>
    %78 = vector.broadcast %77 : vector<16x1xf32> to vector<16x512xf32>
    %79 = arith.addf %76, %78 : vector<16x512xf32>
    %c0_21 = arith.constant 0 : index
    %c0_22 = arith.constant 0 : index
    %80 = vector.load %arg7[%c0_21, %c0_22] : memref<16x512xf32, #tpu.memory_space<vmem>>, vector<16x512xf32>
    tpu.vector_store %arg7[%c0_21, %c0_22], %79 {strides = array<i32>} : memref<16x512xf32, #tpu.memory_space<vmem>>, vector<16x512xf32>,
    return
  }
  func.func @transform_0(%arg0: i32) -> (i32, i32) {
    %c0_i32 = arith.constant 0 : i32
    %c0_i32_0 = arith.constant 0 : i32
    return %c0_i32, %arg0 : i32, i32
  }
  func.func @transform_1(%arg0: i32) -> (i32, i32) {
    %c0_i32 = arith.constant 0 : i32
    %c0_i32_0 = arith.constant 0 : i32
    %c0_i32_1 = arith.constant 0 : i32
    return %c0_i32, %c0_i32_0 : i32, i32
  }
  func.func @transform_2(%arg0: i32) -> (i32, i32) {
    %c0_i32 = arith.constant 0 : i32
    %c0_i32_0 = arith.constant 0 : i32
    %c0_i32_1 = arith.constant 0 : i32
    return %c0_i32, %c0_i32_0 : i32, i32
  }
  func.func @transform_3(%arg0: i32) -> (i32, i32) {
    %c0_i32 = arith.constant 0 : i32
    %c0_i32_0 = arith.constant 0 : i32
    %c0_i32_1 = arith.constant 0 : i32
    return %c0_i32, %c0_i32_0 : i32, i32
  }
  func.func @transform_4(%arg0: i32) -> (i32, i32) {
    %c0_i32 = arith.constant 0 : i32
    %c0_i32_0 = arith.constant 0 : i32
    %c0_i32_1 = arith.constant 0 : i32
    return %c0_i32, %c0_i32_0 : i32, i32
  }
  func.func @transform_5(%arg0: i32) -> (i32, i32) {
    %c0_i32 = arith.constant 0 : i32
    %c0_i32_0 = arith.constant 0 : i32
    %c0_i32_1 = arith.constant 0 : i32
    return %c0_i32, %c0_i32_0 : i32, i32
  }
  func.func @transform_6(%arg0: i32) -> (i32, i32) {
    %c0_i32 = arith.constant 0 : i32
    %c0_i32_0 = arith.constant 0 : i32
    return %c0_i32, %arg0 : i32, i32
  }
}

</mosaic_0001>

<bundles_post_ra>
// kernel: basic_transform_forward.1
= control target key start
LH: loop header
LB: loop body
LE: loop exit
PB: predicated region body
PF: predicated region fallthrough
CT: control target
= control target key end

     0   :  { %s825_s23 = smov 112   ;;  %s826_s24 = smov 111   ;;  %v41_v7 = vlaneseq  ;;  %vm215_vm8 = vcmask 588800   ;;  %vm594_vm9 = vcmask 130048   ;;  %s1892_s0 = inlined_call_operand.vmem [shape: f32[8,512], index: 0, kind: input, shape index: {}]   ;;  %s1893_s1 = inlined_call_operand.vmem [shape: f32[8,512], index: 1, kind: input, shape index: {}]   ;;  %s1894_s3 = inlined_call_operand.vmem [shape: f32[16,1], index: 3, kind: input, shape index: {}]   ;;  %s1895_s2 = inlined_call_operand.vmem [shape: f32[16,72], index: 2, kind: input, shape index: {}]   ;;  %s1896_s5 = inlined_call_operand.vmem [shape: f32[16,1], index: 5, kind: input, shape index: {}]   ;;  %s1897_s4 = inlined_call_operand.vmem [shape: f32[16,144], index: 4, kind: input, shape index: {}]   ;;  %s1898_s6 = inlined_call_operand.vmem [shape: f32[16,512], index: 6, kind: output, shape index: {}]  }
   0x1   :  { %v872_v0 = vld [vmem:[%s1892_s0 + $0x10] sm:$0xff]  ;;  %s827_s25 = smov 113   ;;  %v883_v1 = vld [vmem:[%s1892_s0 + $0x18] sm:$0xff]  ;;  %v894_v2 = vld [vmem:[%s1892_s0 + $0x8] sm:$0xff]  ;;  %s828_s8 = smov 127  }
   0x2   :  { %165 = vrot.lane.b32.xlu1 %v872_v0, %s825_s23  ;;  %186 = vrot.lane.b32.xlu0 %v872_v0, %s826_s24  ;;  %v899_v3 = vld [vmem:[%s1892_s0] sm:$0xff]  ;;  %s829_s0 = smov 1   ;;  %s830_s9 = smov 15   ;;  %v960_v10 = vld [vmem:[%s1893_s1 + $0x10] sm:$0xff]  ;;  %v962_v11 = vand.u32 127, %v41_v7 }
   0x3   :  { %144 = vrot.lane.b32.xlu2 %v872_v0, %s827_s25  ;;  %s831_s10 = smov 16   ;;  %s832_s11 = smov 17   ;;  %v967_v13 = vperm.slane %v960_v10, 7  ;;  %v973_v16 = vperm.slane %v960_v10, 6  ;;  %v976_v17 = vperm.slane %v960_v10, 5  ;;  %v991_v22 = vld [vmem:[%s1893_s1] sm:$0xff] }
   0x4   :  { %vm148_vm0 = vcmp.lt.s32.totalorder %v962_v11, 113  ;;  %vm190_vm1 = vcmp.lt.s32.totalorder %v962_v11, 111  ;;  %vm169_vm2 = vcmp.lt.s32.totalorder %v962_v11, 112  ;;  %v1000_v26 = vld [vmem:[%s1893_s1 + $0x8] sm:$0xff]  ;;  %v1003_v27 = vperm.slane %v991_v22, 7 }
   0x5   :  { %1933 = vst [vmem:[#allocation2_spill] sm:$0xff] %v967_v13  ;;  %v1006_v28 = vperm.slane %v1000_v26, 7  ;;  %v1009_v31 = vperm.slane %v1000_v26, 6  ;;  %vm127_vm3 = vcmp.lt.s32.totalorder %v962_v11, 127  ;;  %v1026_v39 = vperm.slane %v960_v10, 4 }
   0x6   :  { %v1029_v40 = vperm.slane %v991_v22, 6  ;;  %v1044_v48 = vperm.slane %v991_v22, 5  ;;  %v1047_v49 = vperm.slane %v1000_v26, 5  ;;  %v1053_v52 = vperm.slane %v1000_v26, 4 }
   0x7   :  { %vm106_vm4 = vcmp.lt.s32.totalorder %v962_v11, 1  ;;  %v1070_v60 = vperm.slane %v960_v10, 3  ;;  %v1073_v61 = vperm.slane %v991_v22, 4  ;;  %vm85_vm5 = vcmp.lt.s32.totalorder %v962_v11, 15 }
   0x8   :  { %vm64_vm6 = vcmp.lt.s32.totalorder %v962_v11, 16  ;;  %vm43_vm7 = vcmp.lt.s32.totalorder %v962_v11, 17 }
   0x9   :  { %1934 = vst [vmem:[#allocation3_spill] sm:$0xff] %v1070_v60 }
   0xa   :  { %167 = vrot.lane.b32.xlu1 %v883_v1, %s825_s23  ;;  %188 = vrot.lane.b32.xlu0 %v883_v1, %s826_s24 }
   0xb   :  { %146 = vrot.lane.b32.xlu2 %v883_v1, %s827_s25 }
  0x12   :  { %184 = vrot.lane.b32.xlu1 %v894_v2, %s826_s24  ;;  %182 = vrot.lane.b32.xlu0 %v899_v3, %s826_s24 }
  0x13   :  { %123 = vrot.lane.b32.xlu2 %v872_v0, %s828_s8 }
  0x1a   :  { %161 = vrot.lane.b32.xlu1 %v899_v3, %s825_s23  ;;  %125 = vrot.lane.b32.xlu0 %v883_v1, %s828_s8 }
  0x1b   :  { %163 = vrot.lane.b32.xlu2 %v894_v2, %s825_s23 }
  0x22   :  { %142 = vrot.lane.b32.xlu1 %v894_v2, %s827_s25  ;;  %140 = vrot.lane.b32.xlu0 %v899_v3, %s827_s25 }
  0x23   :  { %100 = vrot.lane.b32.xlu2 %v894_v2, %s829_s0 }
  0x2a   :  { %119 = vrot.lane.b32.xlu1 %v899_v3, %s828_s8  ;;  %102 = vrot.lane.b32.xlu0 %v872_v0, %s829_s0 }
  0x2b   :  { %121 = vrot.lane.b32.xlu2 %v894_v2, %s828_s8 }
  0x32   :  { %81 = vrot.lane.b32.xlu1 %v872_v0, %s830_s9  ;;  %79 = vrot.lane.b32.xlu0 %v894_v2, %s830_s9 }
  0x33   :  { %58 = vrot.lane.b32.xlu2 %v894_v2, %s831_s10 }
  0x3a   :  { %98 = vrot.lane.b32.xlu1 %v899_v3, %s829_s0  ;;  %60 = vrot.lane.b32.xlu0 %v872_v0, %s831_s10 }
  0x3b   :  { %104 = vrot.lane.b32.xlu2 %v883_v1, %s829_s0 }
  0x42   :  { %37 = vrot.lane.b32.xlu1 %v872_v0, %s832_s11  ;;  %35 = vrot.lane.b32.xlu0 %v894_v2, %s832_s11 }
  0x43   :  { %77 = vrot.lane.b32.xlu2 %v899_v3, %s830_s9 }
  0x4a   :  { %56 = vrot.lane.b32.xlu1 %v899_v3, %s831_s10  ;;  %83 = vrot.lane.b32.xlu0 %v883_v1, %s830_s9 }
  0x4b   :  { %62 = vrot.lane.b32.xlu2 %v883_v1, %s831_s10 }
  0x52   :  { %39 = vrot.lane.b32.xlu1 %v883_v1, %s832_s11  ;;  %33 = vrot.lane.b32.xlu0 %v899_v3, %s832_s11 }
  0x5d   :  { %v953_v4 = vpop.permute.xlu2 %144 }
  0x65   :  { %v955_v5 = vpop.permute.xlu2 %146 }
  0x66   :  { %v149_v18 = vsel %vm148_vm0, %v953_v4, %v955_v5 }
  0x67   :  { %v159_v24 = vmul.f32 %v976_v17, %v149_v18 }
  0x6d   :  { %v124_v6 = vpop.permute.xlu2 %123 }
  0x74   :  { %v166_v8 = vpop.permute.xlu1 %165  ;;  %v187_v9 = vpop.permute.xlu0 %186 }
  0x75   :  { %v164_v12 = vpop.permute.xlu2 %163 }
  0x76   :  { %v171_v32 = vsel %vm169_vm2, %v164_v12, %v166_v8 }
  0x77   :  { %v179_v38 = vmul.f32 %v1009_v31, %v171_v32 }
  0x7c   :  { %v970_v14 = vpop.permute.xlu1 %167  ;;  %v189_v15 = vpop.permute.xlu0 %188 }
  0x7d   :  { %v170_v19 = vsel %vm169_vm2, %v166_v8, %v970_v14  ;;  %v191_v20 = vsel %vm190_vm1, %v187_v9, %v189_v15  ;;  %v995_v25 = vpop.permute.xlu2 %100 }
  0x7e   :  { %v201_v21 = vmul.f32 %v967_v13, %v191_v20  ;;  %v180_v23 = vmul.f32 %v973_v16, %v170_v19  ;;  %v1104_v20 = vperm.slane %v1000_v26, 3 }
  0x80   :  { %275 = vmatpush.msra.mxu2 %v201_v21  ;;  %v1107_v21 = vperm.slane %v960_v10, 1 }
  0x82   :  { %276 = vmatpush.msra.mxu2 %v180_v23  ;;  %1936 = vst [vmem:[#allocation5_spill] sm:$0xff] %v1107_v21 }
  0x84   :  { %277 = vmatpush.msra.mxu2 %v159_v24  ;;  %v185_v29 = vpop.permute.xlu1 %184  ;;  %v183_v30 = vpop.permute.xlu0 %182 }
  0x85   :  { %v1015_v33 = vsel %vm190_vm1, %v189_v15, %v183_v30  ;;  %v193_v34 = vsel %vm190_vm1, %v183_v30, %v185_v29  ;;  %v192_v35 = vsel %vm190_vm1, %v185_v29, %v187_v9  ;;  %v122_v41 = vpop.permute.xlu2 %121  ;;  %v1115_v29 = vperm.slane %v1000_v26, 2 }
  0x86   :  { %v199_v36 = vmul.f32 %v1003_v27, %v193_v34  ;;  %v200_v37 = vmul.f32 %v1006_v28, %v192_v35  ;;  %v129_v53 = vsel %vm127_vm3, %v122_v41, %v124_v6 }
  0x87   :  { %v137_v59 = vmul.f32 %v1053_v52, %v129_v53 }
  0x88   :  { %229 = vmatpush.msra.mxu3 %v199_v36  ;;  %252 = vmatpush.msra.mxu1 %v200_v37 }
  0x8a   :  { %253 = vmatpush.msra.mxu1 %v179_v38 }
  0x8c   :  { %v1031_v42 = vpop.permute.xlu1 %161  ;;  %v1033_v43 = vpop.permute.xlu0 %125 }
  0x8d   :  { %v172_v44 = vsel %vm169_vm2, %v1031_v42, %v164_v12  ;;  %v128_v45 = vsel %vm127_vm3, %v124_v6, %v1033_v43  ;;  %v1063_v56 = vpop.permute.xlu2 %58 }
  0x8e   :  { %v138_v46 = vmul.f32 %v1026_v39, %v128_v45  ;;  %v178_v47 = vmul.f32 %v1029_v40, %v172_v44  ;;  %v833_v44 = vmov 0  }
  0x8f   :  { %823 = vset.pattern.permute.xlu0 %v833_v44  ;;  %822 = vset.pattern.permute.xlu2 %v833_v44 }
  0x90   :  { %278 = vmatpush.msra.mxu2 %v138_v46  ;;  %230 = vmatpush.msra.mxu3 %v178_v47  ;;  %v203_v47 = vld [vmem:[%s1894_s3] sm:$0xff] }
  0x91   :  { %824 = vset.pattern.permute.xlu1 %v833_v44  ;;  %207 = vperm.xlu0 %823, %v203_v47   ;;  %v173_v44 = vsel %vm169_vm2, %v970_v14, %v1031_v42 }
  0x92   :  { %279 = vmatpush.msra.mxu2 %v872_v0 }
  0x94   :  { %v143_v50 = vpop.permute.xlu1 %142  ;;  %v1050_v51 = vpop.permute.xlu0 %140 }
  0x95   :  { %v150_v54 = vsel %vm148_vm0, %v143_v50, %v953_v4  ;;  %v151_v55 = vsel %vm148_vm0, %v1050_v51, %v143_v50  ;;  %v1089_v8 = vpop.permute.xlu2 %104 }
  0x96   :  { %v157_v57 = vmul.f32 %v1044_v48, %v151_v55  ;;  %v158_v58 = vmul.f32 %v1047_v49, %v150_v54  ;;  %v1154_v54 = vperm.slane %v991_v22, 2  ;;  %v1157_v55 = vperm.slane %v1000_v26, 1 }
  0x98   :  { %231 = vmatpush.msra.mxu3 %v157_v57  ;;  %254 = vmatpush.msra.mxu1 %v158_v58  ;;  %v1160_v57 = vperm.slane %v991_v22, 1 }
  0x9a   :  { %255 = vmatpush.msra.mxu1 %v137_v59 }
  0x9c   :  { %v1075_v62 = vpop.permute.xlu1 %119  ;;  %v1077_v63 = vpop.permute.xlu0 %102  ;;  %256 = vmatpush.msra.mxu1 %v894_v2  ;;  %v1093_v2 = vperm.slane %v960_v10, 2 }
  0x9d   :  { %v130_v0 = vsel %vm127_vm3, %v1075_v62, %v122_v41  ;;  %v108_v4 = vsel %vm106_vm4, %v995_v25, %v1077_v63  ;;  %v78_v19 = vpop.permute.xlu2 %77 }
  0x9e   :  { %v117_v6 = vmul.f32 %v1070_v60, %v108_v4  ;;  %v136_v7 = vmul.f32 %v1073_v61, %v130_v0  ;;  %1935 = vst [vmem:[#allocation4_spill] sm:$0xff] %v1093_v2 }
  0xa0   :  { %280 = vmatpush.msra.mxu2 %v117_v6  ;;  %232 = vmatpush.msra.mxu3 %v136_v7 }
  0xa2   :  { %233 = vmatpush.msra.mxu3 %v899_v3  ;;  %v1110_v3 = vperm.slane %v991_v22, 3 }
  0xa4   :  { %v1096_v9 = vpop.permute.xlu1 %81  ;;  %v80_v12 = vpop.permute.xlu0 %79 }
  0xa5   :  { %v87_v15 = vsel %vm85_vm5, %v80_v12, %v1096_v9  ;;  %v88_v30 = vsel %vm85_vm5, %v78_v19, %v80_v12  ;;  %v63_v58 = vpop.permute.xlu2 %62 }
  0xa6   :  { %v96_v18 = vmul.f32 %v1093_v2, %v87_v15  ;;  %v95_v41 = vmul.f32 %v1115_v29, %v88_v30  ;;  %v1183_v30 = vperm.slane %v1000_v26, 0 }
  0xa8   :  { %281 = vmatpush.msra.mxu2 %v96_v18 }
  0xac   :  { %v99_v23 = vpop.permute.xlu1 %98  ;;  %v1112_v24 = vpop.permute.xlu0 %60 }
  0xad   :  { %v109_v32 = vsel %vm106_vm4, %v99_v23, %v995_v25  ;;  %v110_v34 = vsel %vm106_vm4, %v1089_v8, %v99_v23  ;;  %v66_v35 = vsel %vm64_vm6, %v1063_v56, %v1112_v24  ;;  %v1135_v25 = vperm.slane %v960_v10, 0  ;;  %v1149_v10 = vld [vmem:[%s1895_s2] sm:$0xff]  ;;  %v32_v23 = vld [vmem:[%s1895_s2 + $0x8] sm:$0xff] }
  0xae   :  { %v116_v36 = vmul.f32 %v1104_v20, %v109_v32  ;;  %v75_v37 = vmul.f32 %v1107_v21, %v66_v35  ;;  %v115_v38 = vmul.f32 %v1110_v3, %v110_v34  ;;  %v204_v32 = vld [vmem:[%s1894_s3 + $0x8] sm:$0xff] }
  0xaf   :  { %1937 = vst [vmem:[#allocation6_spill] sm:$0xff] %v1135_v25  ;;  %212 = vperm.xlu2 %822, %v204_v32  }
  0xb0   :  { %257 = vmatpush.msra.mxu1 %v116_v36  ;;  %282 = vmatpush.msra.mxu2 %v75_v37 }
  0xb1   :  { %234 = vmatpush.msra.mxu3 %v115_v38 }
  0xb2   :  { %258 = vmatpush.msra.mxu1 %v95_v41 }
  0xb4   :  { %v1137_v45 = vpop.permute.xlu1 %37  ;;  %v36_v46 = vpop.permute.xlu0 %35 }
  0xb5   :  { %v45_v50 = vsel %vm43_vm7, %v36_v46, %v1137_v45 }
  0xb6   :  { %v54_v53 = vmul.f32 %v1135_v25, %v45_v50  ;;  %v152_v50 = vsel %vm148_vm0, %v955_v5, %v1050_v51 }
  0xb8   :  { %283 = vmatpush.msra.mxu2 %v54_v53 }
  0xb9   :  { %801 = vmatmul.msk.f32.vlgmr.msra.gmra.mxu2 %vm215_vm8, %v1149_v10 }
  0xbc   :  { %v57_v59 = vpop.permute.xlu1 %56  ;;  %v84_v0 = vpop.permute.xlu0 %83 }
  0xbd   :  { %v67_v4 = vsel %vm64_vm6, %v57_v59, %v1063_v56  ;;  %v68_v6 = vsel %vm64_vm6, %v63_v58, %v57_v59  ;;  %v89_v7 = vsel %vm85_vm5, %v84_v0, %v78_v19  ;;  %v26_v56 = vld [vmem:[%s1893_s1 + $0x18] sm:$0xff]  ;;  %v1180_v19 = vperm.slane %v991_v22, 0 }
  0xbe   :  { %v94_v12 = vmul.f32 %v1154_v54, %v89_v7  ;;  %v74_v15 = vmul.f32 %v1157_v55, %v67_v4  ;;  %v73_v18 = vmul.f32 %v1160_v57, %v68_v6  ;;  %v1188_v36 = vperm.slane %v26_v56, 7 }
  0xbf   :  { %1938 = vst [vmem:[#allocation7_spill] sm:$0xff] %v1180_v19  ;;  %v1196_v41 = vperm.slane %v26_v56, 6  ;;  %v1215_v42 = vperm.slane %v26_v56, 4  ;;  %v1223_v51 = vperm.slane %v26_v56, 3  ;;  %v107_v59 = vsel %vm106_vm4, %v1077_v63, %v1089_v8 }
  0xc0   :  { %235 = vmatpush.msra.mxu3 %v94_v12  ;;  %259 = vmatpush.msra.mxu1 %v74_v15  ;;  %1939 = vst [vmem:[#allocation8_spill] sm:$0xff] %v1188_v36  ;;  %v202_v47 = vmul.f32 %v1188_v36, %v1015_v33  ;;  %v131_v33 = vsel %vm127_vm3, %v1033_v43, %v1075_v62  ;;  %v1229_v4 = vperm.slane %v26_v56, 2  ;;  %v1238_v6 = vperm.slane %v26_v56, 1 }
  0xc1   :  { %802 = vmatmul.msk.f32.gmra.mxu2 %vm215_vm8, %v32_v23  ;;  %1940 = vst [vmem:[#allocation9_spill] sm:$0xff] %v1196_v41  ;;  %v181_v14 = vmul.f32 %v1196_v41, %v173_v44  ;;  %v139_v5 = vmul.f32 %v1215_v42, %v131_v33  ;;  %v86_v43 = vsel %vm85_vm5, %v1096_v9, %v84_v0  ;;  %v1244_v7 = vperm.slane %v26_v56, 0 }
  0xc2   :  { %236 = vmatpush.msra.mxu3 %v73_v18  ;;  %1942 = vst [vmem:[#allocation11_spill] sm:$0xff] %v1215_v42  ;;  %v118_v62 = vmul.f32 %v1223_v51, %v107_v59  ;;  %v65_v63 = vsel %vm64_vm6, %v1112_v24, %v63_v58  ;;  %v97_v8 = vmul.f32 %v1229_v4, %v86_v43 }
  0xc3   :  { %1943 = vst [vmem:[#allocation12_spill] sm:$0xff] %v1223_v51 }
  0xc4   :  { %v40_v34 = vpop.permute.xlu1 %39  ;;  %v34_v35 = vpop.permute.xlu0 %33  ;;  %1944 = vst [vmem:[#allocation13_spill] sm:$0xff] %v1229_v4 }
  0xc5   :  { %v46_v37 = vsel %vm43_vm7, %v34_v35, %v36_v46  ;;  %v47_v38 = vsel %vm43_vm7, %v40_v34, %v34_v35  ;;  %v1204_v46 = vperm.slane %v26_v56, 5  ;;  %1945 = vst [vmem:[#allocation14_spill] sm:$0xff] %v1238_v6  ;;  %v44_v9 = vsel %vm43_vm7, %v1137_v45, %v40_v34 }
  0xc6   :  { %v52_v22 = vmul.f32 %v1180_v19, %v47_v38  ;;  %v53_v26 = vmul.f32 %v1183_v30, %v46_v37  ;;  %1946 = vst [vmem:[#allocation15_spill] sm:$0xff] %v1244_v7  ;;  %v55_v0 = vmul.f32 %v1244_v7, %v44_v9 }
  0xc7   :  { %1941 = vst [vmem:[#allocation10_spill] sm:$0xff] %v1204_v46  ;;  %v160_v53 = vmul.f32 %v1204_v46, %v152_v50 }
  0xc8   :  { %237 = vmatpush.msra.mxu3 %v52_v22  ;;  %260 = vmatpush.msra.mxu1 %v53_v26 }
  0xc9   :  { %797 = vmatmul.msk.f32.vlgmr.msra.gmra.mxu3 %vm215_vm8, %v1149_v10  ;;  %799 = vmatmul.msk.f32.vlgmr.msra.gmra.mxu1 %vm215_vm8, %v1149_v10 }
  0xca   :  { %298 = vmatpush.msrb.mxu3 %v202_v47 }
  0xcc   :  { %299 = vmatpush.msrb.mxu3 %v181_v14 }
  0xce   :  { %300 = vmatpush.msrb.mxu3 %v160_v53 }
  0xd0   :  { %301 = vmatpush.msrb.mxu3 %v139_v5 }
  0xd1   :  { %798 = vmatmul.msk.f32.gmra.mxu3 %vm215_vm8, %v32_v23  ;;  %800 = vmatmul.msk.f32.gmra.mxu1 %vm215_vm8, %v32_v23 }
  0xd2   :  { %302 = vmatpush.msrb.mxu3 %v883_v1  ;;  %v76_v1 = vmul.f32 %v1238_v6, %v65_v63 }
  0xd4   :  { %303 = vmatpush.msrb.mxu3 %v118_v62 }
  0xd6   :  { %304 = vmatpush.msrb.mxu3 %v97_v8 }
  0xd8   :  { %305 = vmatpush.msrb.mxu3 %v76_v1 }
  0xda   :  { %306 = vmatpush.msrb.mxu3 %v55_v0 }
  0xdb   :  { %803 = vmatmul.msk.f32.vlgmr.msrb.gmra.mxu3 %vm215_vm8, %v1149_v10 }
  0xe3   :  { %804 = vmatmul.msk.f32.gmra.mxu3 %vm215_vm8, %v32_v23 }
 0x103   :  { %v208_v24 = vpop.permute.xlu0 %207 }
 0x109   :  { %v213_v34 = vpop.permute.xlu2 %212 }
 0x13c   :  { %v285_v18 = vpop.f32.mrf.mxu2 }
 0x13d   :  { %v286_v23 = vadd.f32 %v285_v18, %v208_v24 }
 0x13f   :  { %v1270_v32 = vmax.f32 %v286_v23, 0.0 }
 0x141   :  { %1947 = vst [vmem:[#allocation16_spill] sm:$0xff] %v1270_v32 }
 0x144   :  { %v288_v47 = vpop.f32.mrf.mxu2 }
 0x145   :  { %v289_v50 = vadd.f32 %v288_v47, %v213_v34 }
 0x146   :  { %v262_v58 = vpop.f32.mrf.mxu1 }
 0x147   :  { %v263_v12 = vadd.f32 %v262_v58, %v208_v24  ;;  %v1318_v14 = vmax.f32 %v289_v50, 0.0 }
 0x149   :  { %v1254_v15 = vmax.f32 %v263_v12, 0.0 }
 0x14b   :  { %426 = vrot.lane.b32.xlu2 %v1254_v15, %s829_s0  ;;  %490 = vrot.lane.b32.xlu0 %v1254_v15, %s827_s25 }
 0x14c   :  { %522 = vrot.lane.b32.xlu1 %v1254_v15, %s825_s23  ;;  %v239_v45 = vpop.f32.mrf.mxu3 }
 0x14d   :  { %v240_v10 = vadd.f32 %v239_v45, %v208_v24 }
 0x14e   :  { %v265_v35 = vpop.f32.mrf.mxu1 }
 0x14f   :  { %v1268_v56 = vmax.f32 %v240_v10, 0.0  ;;  %v266_v37 = vadd.f32 %v265_v35, %v213_v34 }
 0x151   :  { %v1284_v38 = vmax.f32 %v266_v37, 0.0 }
 0x153   :  { %394 = vrot.lane.b32.xlu2 %v1254_v15, %s830_s9  ;;  %458 = vrot.lane.b32.xlu0 %v1254_v15, %s828_s8 }
 0x154   :  { %362 = vrot.lane.b32.xlu1 %v1254_v15, %s831_s10  ;;  %v242_v22 = vpop.f32.mrf.mxu3 }
 0x155   :  { %v243_v26 = vadd.f32 %v242_v22, %v213_v34 }
 0x157   :  { %v1310_v44 = vmax.f32 %v243_v26, 0.0 }
 0x15b   :  { %330 = vrot.lane.b32.xlu2 %v1254_v15, %s832_s11  ;;  %358 = vrot.lane.b32.xlu0 %v1268_v56, %s831_s10 }
 0x15c   :  { %494 = vrot.lane.b32.xlu1 %v1270_v32, %s827_s25 }
 0x15e   :  { %v308_v33 = vpop.f32.mrf.mxu3 }
 0x15f   :  { %v309_v53 = vadd.f32 %v308_v33, %v208_v24 }
 0x161   :  { %v1332_v5 = vmax.f32 %v309_v53, 0.0 }
 0x163   :  { %554 = vrot.lane.b32.xlu2 %v1254_v15, %s826_s24  ;;  %558 = vrot.lane.b32.xlu0 %v1270_v32, %s826_s24  ;;  %1948 = vst [vmem:[#allocation17_spill] sm:$0xff] %v1332_v5 }
 0x164   :  { %462 = vrot.lane.b32.xlu1 %v1270_v32, %s828_s8 }
 0x166   :  { %v311_v63 = vpop.f32.mrf.mxu3 }
 0x167   :  { %v312_v8 = vadd.f32 %v311_v63, %v213_v34  ;;  %v582_v63 = vld [vmem:[%s1896_s5] sm:$0xff] }
 0x169   :  { %v1368_v24 = vmax.f32 %v312_v8, 0.0 }
 0x16b   :  { %526 = vrot.lane.b32.xlu2 %v1270_v32, %s825_s23  ;;  %492 = vrot.lane.b32.xlu0 %v1284_v38, %s827_s25  ;;  %1949 = vst [vmem:[#allocation18_spill] sm:$0xff] %v1368_v24 }
 0x16c   :  { %454 = vrot.lane.b32.xlu1 %v1268_v56, %s828_s8 }
 0x173   :  { %460 = vrot.lane.b32.xlu0 %v1284_v38, %s828_s8  ;;  %518 = vrot.lane.b32.xlu2 %v1268_v56, %s825_s23 }
 0x174   :  { %422 = vrot.lane.b32.xlu1 %v1268_v56, %s829_s0 }
 0x17b   :  { %428 = vrot.lane.b32.xlu0 %v1284_v38, %s829_s0  ;;  %486 = vrot.lane.b32.xlu2 %v1268_v56, %s827_s25 }
 0x17c   :  { %390 = vrot.lane.b32.xlu1 %v1268_v56, %s830_s9 }
 0x183   :  { %364 = vrot.lane.b32.xlu0 %v1284_v38, %s831_s10  ;;  %332 = vrot.lane.b32.xlu2 %v1284_v38, %s832_s11 }
 0x184   :  { %326 = vrot.lane.b32.xlu1 %v1268_v56, %s832_s11 }
 0x18b   :  { %456 = vrot.lane.b32.xlu0 %v1310_v44, %s828_s8  ;;  %556 = vrot.lane.b32.xlu2 %v1284_v38, %s826_s24 }
 0x18c   :  { %550 = vrot.lane.b32.xlu1 %v1268_v56, %s826_s24 }
 0x193   :  { %392 = vrot.lane.b32.xlu0 %v1310_v44, %s830_s9  ;;  %528 = vrot.lane.b32.xlu2 %v1318_v14, %s825_s23 }
 0x194   :  { %524 = vrot.lane.b32.xlu1 %v1284_v38, %s825_s23 }
 0x19b   :  { %560 = vrot.lane.b32.xlu0 %v1318_v14, %s826_s24  ;;  %520 = vrot.lane.b32.xlu2 %v1310_v44, %s825_s23 }
 0x19c   :  { %396 = vrot.lane.b32.xlu1 %v1284_v38, %s830_s9 }
 0x1a3   :  { %434 = vrot.lane.b32.xlu0 %v1332_v5, %s829_s0  ;;  %488 = vrot.lane.b32.xlu2 %v1310_v44, %s827_s25 }
 0x1a4   :  { %496 = vrot.lane.b32.xlu1 %v1318_v14, %s827_s25 }
 0x1a5   :  { %v1340_v59 = vpop.permute.xlu2 %426 }
 0x1ab   :  { %498 = vrot.lane.b32.xlu0 %v1332_v5, %s827_s25  ;;  %424 = vrot.lane.b32.xlu2 %v1310_v44, %s829_s0 }
 0x1ac   :  { %464 = vrot.lane.b32.xlu1 %v1318_v14, %s828_s8 }
 0x1ad   :  { %v1348_v43 = vpop.permute.xlu2 %394 }
 0x1b3   :  { %370 = vrot.lane.b32.xlu0 %v1332_v5, %s831_s10  ;;  %360 = vrot.lane.b32.xlu2 %v1310_v44, %s831_s10 }
 0x1b4   :  { %328 = vrot.lane.b32.xlu1 %v1310_v44, %s832_s11 }
 0x1b5   :  { %v1356_v62 = vpop.permute.xlu2 %330 }
 0x1bb   :  { %338 = vrot.lane.b32.xlu0 %v1332_v5, %s832_s11  ;;  %552 = vrot.lane.b32.xlu2 %v1310_v44, %s826_s24 }
 0x1bc   :  { %530 = vrot.lane.b32.xlu1 %v1332_v5, %s825_s23 }
 0x1bd   :  { %v1364_v9 = vpop.permute.xlu2 %554  ;;  %v1366_v1 = vpop.permute.xlu0 %490 }
 0x1be   :  { %v523_v0 = vpop.permute.xlu1 %522 }
 0x1c3   :  { %532 = vrot.lane.b32.xlu0 %v1368_v24, %s825_s23  ;;  %402 = vrot.lane.b32.xlu2 %v1332_v5, %s830_s9 }
 0x1c4   :  { %466 = vrot.lane.b32.xlu1 %v1332_v5, %s828_s8 }
 0x1c5   :  { %v1376_v58 = vpop.permute.xlu2 %526  ;;  %v1378_v12 = vpop.permute.xlu0 %458 }
 0x1c6   :  { %v1380_v45 = vpop.permute.xlu1 %362  ;;  %v536_v21 = vsel %vm169_vm2, %v523_v0, %v1376_v58 }
 0x1cb   :  { %372 = vrot.lane.b32.xlu0 %v1368_v24, %s831_s10  ;;  %436 = vrot.lane.b32.xlu2 %v1368_v24, %s829_s0 }
 0x1cc   :  { %404 = vrot.lane.b32.xlu1 %v1368_v24, %s830_s9 }
 0x1cd   :  { %v1388_v18 = vpop.permute.xlu0 %358  ;;  %v1390_v10 = vpop.permute.xlu2 %518 }
 0x1ce   :  { %1950 = vst [vmem:[#allocation19_spill] sm:$0xff] %v1390_v10  ;;  %v1392_v23 = vpop.permute.xlu1 %494  ;;  %v538_v46 = vsel %vm169_vm2, %v1390_v10, %v523_v0  ;;  %v543_v10 = vmul.f32 %v536_v21, %v1009_v31 }
 0x1cf   :  { %v542_v0 = vmul.f32 %v538_v46, %v1029_v40 }
 0x1d3   :  { %430 = vrot.lane.b32.xlu0 %v1270_v32, %s829_s0  ;;  %500 = vrot.lane.b32.xlu2 %v1368_v24, %s827_s25 }
 0x1d4   :  { %400 = vrot.lane.b32.xlu1 %v1318_v14, %s830_s9 }
 0x1d5   :  { %v1400_v34 = vpop.permute.xlu0 %558  ;;  %v1402_v35 = vpop.permute.xlu2 %486 }
 0x1d6   :  { %v1404_v37 = vpop.permute.xlu1 %462 }
 0x1db   :  { %368 = vrot.lane.b32.xlu0 %v1318_v14, %s831_s10  ;;  %432 = vrot.lane.b32.xlu2 %v1318_v14, %s829_s0 }
 0x1dc   :  { %468 = vrot.lane.b32.xlu1 %v1368_v24, %s828_s8 }
 0x1dd   :  { %v1412_v22 = vpop.permute.xlu0 %492  ;;  %v1414_v26 = vpop.permute.xlu2 %332 }
 0x1de   :  { %v1416_v47 = vpop.permute.xlu1 %454 }
 0x1df   :  { %v474_v46 = vsel %vm127_vm3, %v1416_v47, %v1378_v12 }
 0x1e3   :  { %562 = vrot.lane.b32.xlu0 %v1332_v5, %s826_s24  ;;  %398 = vrot.lane.b32.xlu2 %v1270_v32, %s830_s9 }
 0x1e4   :  { %340 = vrot.lane.b32.xlu1 %v1368_v24, %s832_s11 }
 0x1e5   :  { %v1424_v50 = vpop.permute.xlu0 %460  ;;  %v557_v33 = vpop.permute.xlu2 %556 }
 0x1e6   :  { %v1426_v53 = vpop.permute.xlu1 %422 }
 0x1eb   :  { %586 = vperm.xlu0 %823, %v582_v63   ;;  %366 = vrot.lane.b32.xlu2 %v1270_v32, %s831_s10 }
 0x1ec   :  { %564 = vrot.lane.b32.xlu1 %v1368_v24, %s826_s24 }
 0x1ed   :  { %v1435_v8 = vpop.permute.xlu0 %428  ;;  %v1437_v7 = vpop.permute.xlu2 %528 }
 0x1ee   :  { %v1439_v6 = vpop.permute.xlu1 %390 }
 0x1f3   :  { %334 = vrot.lane.b32.xlu2 %v1270_v32, %s832_s11 }
 0x1f4   :  { %336 = vrot.lane.b32.xlu1 %v1318_v14, %s832_s11 }
 0x1f5   :  { %v1445_v4 = vpop.permute.xlu0 %364  ;;  %v1447_v63 = vpop.permute.xlu2 %520 }
 0x1f6   :  { %v1449_v51 = vpop.permute.xlu1 %326 }
 0x1fd   :  { %v1451_v5 = vpop.permute.xlu0 %456  ;;  %v1453_v24 = vpop.permute.xlu2 %488 }
 0x1fe   :  { %1951 = vst [vmem:[#allocation20_spill] sm:$0xff] %v1451_v5  ;;  %v1455_v25 = vpop.permute.xlu1 %550  ;;  %v507_v60 = vsel %vm148_vm0, %v1453_v24, %v1412_v22 }
 0x205   :  { %v1457_v42 = vpop.permute.xlu0 %392  ;;  %v1459_v36 = vpop.permute.xlu2 %424 }
 0x206   :  { %v525_v13 = vpop.permute.xlu1 %524 }
 0x207   :  { %v537_v41 = vsel %vm169_vm2, %v525_v13, %v1437_v7  ;;  %v539_v2 = vsel %vm169_vm2, %v1447_v63, %v525_v13  ;;  %v506_v13 = vsel %vm148_vm0, %v1402_v35, %v1366_v1 }
 0x208   :  { %v546_v19 = vmul.f32 %v539_v2, %v1029_v40  ;;  %v547_v32 = vmul.f32 %v537_v41, %v1009_v31  ;;  %v514_v2 = vmul.f32 %v507_v60, %v1044_v48  ;;  %v475_v41 = vsel %vm127_vm3, %v1451_v5, %v1424_v50 }
 0x209   :  { %v568_v31 = vsel %vm190_vm1, %v1364_v9, %v1400_v34  ;;  %v510_v60 = vmul.f32 %v506_v13, %v1044_v48  ;;  %v570_v13 = vsel %vm190_vm1, %v1455_v25, %v1364_v9 }
 0x20a   :  { %601 = vmatpush.msra.mxu0 %v546_v19  ;;  %647 = vmatpush.msrb.mxu2 %v547_v32  ;;  %v575_v5 = vmul.f32 %v568_v31, %v1006_v28 }
 0x20c   :  { %602 = vmatpush.msra.mxu0 %v542_v0  ;;  %648 = vmatpush.msrb.mxu2 %v543_v10  ;;  %v482_v0 = vmul.f32 %v475_v41, %v1073_v61  ;;  %v574_v41 = vmul.f32 %v570_v13, %v1003_v27  ;;  %v442_v13 = vsel %vm106_vm4, %v1426_v53, %v1340_v59 }
 0x20d   :  { %v1490_v19 = vpop.permute.xlu0 %560  ;;  %v1492_v32 = vpop.permute.xlu2 %360 }
 0x20e   :  { %1952 = vst [vmem:[#allocation21_spill] sm:$0xff] %v1490_v19  ;;  %v569_v40 = vsel %vm190_vm1, %v557_v33, %v1490_v19  ;;  %v1501_v21 = vpop.permute.xlu1 %396  ;;  %603 = vmatpush.msra.mxu0 %v514_v2  ;;  %v478_v19 = vmul.f32 %v474_v46, %v1073_v61  ;;  %v504_v61 = vsel %vm148_vm0, %v1366_v1, %v1392_v23 }
 0x20f   :  { %v579_v10 = vmul.f32 %v569_v40, %v1006_v28  ;;  %v511_v1 = vmul.f32 %v504_v61, %v1047_v49  ;;  %v443_v46 = vsel %vm106_vm4, %v1459_v36, %v1435_v8 }
 0x210   :  { %604 = vmatpush.msra.mxu0 %v510_v60  ;;  %v451_v61 = vmul.f32 %v443_v46, %v1104_v20 }
 0x211   :  { %684 = vmatpush.msra.mxu3 %v579_v10 }
 0x212   :  { %605 = vmatpush.msra.mxu0 %v482_v0 }
 0x213   :  { %685 = vmatpush.msra.mxu3 %v575_v5 }
 0x214   :  { %606 = vmatpush.msra.mxu0 %v478_v19  ;;  %v472_v19 = vsel %vm127_vm3, %v1378_v12, %v1404_v37 }
 0x215   :  { %v1512_v2 = vpop.permute.xlu0 %434  ;;  %v1514_v48 = vpop.permute.xlu2 %552  ;;  %v479_v60 = vmul.f32 %v472_v19, %v1053_v52 }
 0x216   :  { %v1520_v40 = vpop.permute.xlu1 %496  ;;  %607 = vmatpush.msra.mxu0 %v1310_v44  ;;  %v571_v28 = vsel %vm190_vm1, %v1514_v48, %v557_v33  ;;  %v1541_v33 = vld [vmem:[%s1897_s4 + $0x8] sm:$0xff]  ;;  %v444_v12 = vsel %vm106_vm4, %v1512_v2, %v1426_v53  ;;  %v410_v53 = vsel %vm85_vm5, %v1439_v6, %v1348_v43 }
 0x217   :  { %v505_v5 = vsel %vm148_vm0, %v1412_v22, %v1520_v40  ;;  %v578_v9 = vmul.f32 %v571_v28, %v1003_v27  ;;  %807 = vmatmul.msk.f32.vlgmr.msra.gmra.mxu3 %vm594_vm9, %v1541_v33 }
 0x218   :  { %608 = vmatpush.msra.mxu0 %v1268_v56  ;;  %v515_v44 = vmul.f32 %v505_v5, %v1047_v49  ;;  %v446_v5 = vmul.f32 %v444_v12, %v1110_v3 }
 0x219   :  { %638 = vmatpush.msrb.mxu1 %v578_v9  ;;  %v379_v9 = vsel %vm64_vm6, %v1492_v32, %v1445_v4 }
 0x21a   :  { %649 = vmatpush.msrb.mxu2 %v515_v44 }
 0x21b   :  { %639 = vmatpush.msrb.mxu1 %v574_v41  ;;  %v378_v41 = vsel %vm64_vm6, %v1388_v18, %v1380_v45 }
 0x21c   :  { %650 = vmatpush.msrb.mxu2 %v511_v1  ;;  %805 = vmatmul.msk.f32.vlgmr.msrb.gmra.mxu1 %vm594_vm9, %v1541_v33  ;;  %v387_v1 = vmul.f32 %v379_v9, %v1157_v55 }
 0x21d   :  { %v1548_v56 = vpop.permute.xlu0 %498  ;;  %v1550_v27 = vpop.permute.xlu2 %402 }
 0x21e   :  { %v1552_v22 = vpop.permute.xlu1 %464 }
 0x21f   :  { %v473_v49 = vsel %vm127_vm3, %v1424_v50, %v1552_v22 }
 0x220   :  { %v483_v31 = vmul.f32 %v473_v49, %v1053_v52  ;;  %v383_v49 = vmul.f32 %v378_v41, %v1157_v55 }
 0x222   :  { %651 = vmatpush.msrb.mxu2 %v483_v31 }
 0x224   :  { %652 = vmatpush.msrb.mxu2 %v479_v60 }
 0x225   :  { %v1568_v10 = vpop.permute.xlu0 %370  ;;  %v1570_v0 = vpop.permute.xlu2 %436 }
 0x226   :  { %v1576_v50 = vpop.permute.xlu1 %328  ;;  %653 = vmatpush.msrb.mxu2 %v1284_v38  ;;  %v445_v52 = vsel %vm106_vm4, %v1570_v0, %v1459_v36  ;;  %v411_v38 = vsel %vm85_vm5, %v1457_v42, %v1501_v21  ;;  %v447_v36 = vmul.f32 %v442_v13, %v1104_v20  ;;  %v415_v20 = vmul.f32 %v410_v53, %v1115_v29 }
 0x227   :  { %v450_v28 = vmul.f32 %v445_v52, %v1110_v3  ;;  %v347_v19 = vsel %vm43_vm7, %v1576_v50, %v1414_v26 }
 0x228   :  { %654 = vmatpush.msrb.mxu2 %v1254_v15  ;;  %v419_v15 = vmul.f32 %v411_v38, %v1115_v29  ;;  %v346_v29 = vsel %vm43_vm7, %v1449_v51, %v1356_v62  ;;  %v355_v31 = vmul.f32 %v347_v19, %v1183_v30 }
 0x229   :  { %609 = vmatpush.msra.mxu0 %v450_v28  ;;  %v351_v13 = vmul.f32 %v346_v29, %v1183_v30  ;;  %v1640_v28 = vld [vmem:[%s1897_s4] sm:$0xff]  ;;  %v502_v30 = vsel %vm148_vm0, %v1392_v23, %v1548_v56 }
 0x22a   :  { %655 = vmatpush.msrb.mxu2 %v451_v61 }
 0x22b   :  { %610 = vmatpush.msra.mxu0 %v446_v5  ;;  %v512_v5 = vmul.f32 %v502_v30, %v976_v17  ;;  %v1956_v30 = vld [vmem:[#allocation19_spill] sm:$0xff] }
 0x22c   :  { %656 = vmatpush.msrb.mxu2 %v447_v36 }
 0x22d   :  { %v1605_v44 = vpop.permute.xlu0 %338  ;;  %v1625_v60 = vpop.permute.xlu2 %500 }
 0x22e   :  { %v1607_v3 = vpop.permute.xlu1 %530  ;;  %657 = vmatpush.msrb.mxu2 %v419_v15 }
 0x22f   :  { %v534_v12 = vsel %vm169_vm2, %v1376_v58, %v1607_v3  ;;  %v503_v58 = vsel %vm148_vm0, %v1520_v40, %v1625_v60 }
 0x230   :  { %658 = vmatpush.msrb.mxu2 %v415_v20  ;;  %v516_v38 = vmul.f32 %v503_v58, %v976_v17  ;;  %v1671_v17 = vld [vmem:[%s1897_s4 + $0x18] sm:$0xff]  ;;  %v1954_v58 = vld [vmem:[#allocation16_spill] sm:$0xff] }
 0x231   :  { %808 = vmatmul.msk.f32.gmra.mxu3 %vm594_vm9, %v1671_v17  ;;  %806 = vmatmul.msk.f32.gmra.mxu1 %vm594_vm9, %v1671_v17 }
 0x232   :  { %659 = vmatpush.msrb.mxu2 %v387_v1 }
 0x234   :  { %660 = vmatpush.msrb.mxu2 %v383_v49 }
 0x235   :  { %v533_v46 = vpop.permute.xlu0 %532  ;;  %v1687_v20 = vpop.permute.xlu2 %432 }
 0x236   :  { %v535_v55 = vsel %vm169_vm2, %v1437_v7, %v533_v46  ;;  %v1634_v52 = vpop.permute.xlu1 %466  ;;  %661 = vmatpush.msrb.mxu2 %v355_v31  ;;  %v544_v7 = vmul.f32 %v534_v12, %v973_v16 }
 0x237   :  { %v548_v61 = vmul.f32 %v535_v55, %v973_v16  ;;  %v412_v16 = vsel %vm85_vm5, %v1550_v27, %v1439_v6  ;;  %v380_v6 = vsel %vm64_vm6, %v1568_v10, %v1388_v18  ;;  %v470_v18 = vsel %vm127_vm3, %v1404_v37, %v1634_v52 }
 0x238   :  { %662 = vmatpush.msrb.mxu2 %v351_v13  ;;  %v382_v41 = vmul.f32 %v380_v6, %v1160_v57  ;;  %v480_v31 = vmul.f32 %v470_v18, %v1026_v39  ;;  %v441_v37 = vsel %vm106_vm4, %v1435_v8, %v1687_v20  ;;  %v1953_v8 = vld [vmem:[#allocation3_spill] sm:$0xff] }
 0x239   :  { %663 = vmatmul.f32.vlgmr.msrb.gmra.mxu2 %v1640_v28  ;;  %693 = vmatpush.msra.mxu1 %v548_v61  ;;  %v452_v61 = vmul.f32 %v441_v37, %v1953_v8 }
 0x23b   :  { %694 = vmatpush.msra.mxu1 %v544_v7 }
 0x23d   :  { %695 = vmatpush.msra.mxu1 %v516_v38  ;;  %v1655_v36 = vpop.permute.xlu0 %372 }
 0x23e   :  { %v1657_v40 = vpop.permute.xlu1 %404  ;;  %v381_v15 = vsel %vm64_vm6, %v1655_v36, %v1492_v32 }
 0x23f   :  { %v413_v23 = vsel %vm85_vm5, %v1657_v40, %v1457_v42  ;;  %696 = vmatpush.msra.mxu1 %v512_v5  ;;  %v414_v42 = vmul.f32 %v412_v16, %v1154_v54  ;;  %v386_v9 = vmul.f32 %v381_v15, %v1160_v57  ;;  %v1707_v57 = vpop.permute.xlu2 %398  ;;  %v1958_v15 = vld [vmem:[#allocation9_spill] sm:$0xff] }
 0x240   :  { %v418_v53 = vmul.f32 %v413_v23, %v1154_v54  ;;  %v1697_v54 = vld [vmem:[%s1897_s4 + $0x10] sm:$0xff] }
 0x241   :  { %666 = vmatmul.f32.gmra.mxu2 %v1697_v54 }
 0x242   :  { %611 = vmatpush.msra.mxu0 %v418_v53 }
 0x244   :  { %612 = vmatpush.msra.mxu0 %v414_v42 }
 0x245   :  { %v1692_v1 = vpop.permute.xlu0 %430 }
 0x246   :  { %v1689_v32 = vpop.permute.xlu1 %400  ;;  %613 = vmatpush.msra.mxu0 %v386_v9 }
 0x247   :  { %v1747_v5 = vpop.permute.xlu2 %366 }
 0x248   :  { %614 = vmatpush.msra.mxu0 %v382_v41  ;;  %v376_v6 = vsel %vm64_vm6, %v1380_v45, %v1747_v5  ;;  %v1959_v41 = vld [vmem:[#allocation10_spill] sm:$0xff] }
 0x24d   :  { %v1711_v12 = vpop.permute.xlu0 %368 }
 0x24e   :  { %v469_v19 = vpop.permute.xlu1 %468  ;;  %v377_v23 = vsel %vm64_vm6, %v1445_v4, %v1711_v12 }
 0x24f   :  { %v471_v49 = vsel %vm127_vm3, %v1552_v22, %v469_v19  ;;  %v348_v22 = vsel %vm43_vm7, %v1605_v44, %v1449_v51  ;;  %v541_v51 = vsel %vm169_vm2, %v533_v46, %v1447_v63  ;;  %v509_v63 = vsel %vm148_vm0, %v1625_v60, %v1453_v24  ;;  %v1957_v46 = vld [vmem:[#allocation4_spill] sm:$0xff]  ;;  %v583_v60 = vld [vmem:[%s1896_s5 + $0x8] sm:$0xff] }
 0x250   :  { %v484_v29 = vmul.f32 %v471_v49, %v1026_v39  ;;  %v440_v39 = vsel %vm106_vm4, %v1340_v59, %v1692_v1  ;;  %v409_v59 = vsel %vm85_vm5, %v1501_v21, %v1689_v32  ;;  %v408_v21 = vsel %vm85_vm5, %v1348_v43, %v1707_v57  ;;  %591 = vperm.xlu1 %824, %v583_v60  }
 0x251   :  { %v448_v38 = vmul.f32 %v440_v39, %v1953_v8  ;;  %v549_v42 = vmul.f32 %v541_v51, %v1958_v15  ;;  %v508_v24 = vsel %vm148_vm0, %v1548_v56, %v1402_v35  ;;  %v416_v4 = vmul.f32 %v408_v21, %v1957_v46  ;;  %v1960_v56 = vld [vmem:[#allocation5_spill] sm:$0xff]  ;;  %v335_v51 = vpop.permute.xlu2 %334 }
 0x252   :  { %697 = vmatpush.msra.mxu1 %v484_v29  ;;  %v517_v35 = vmul.f32 %v509_v63, %v1959_v41  ;;  %v388_v18 = vmul.f32 %v377_v23, %v1960_v56  ;;  %v1961_v29 = vld [vmem:[#allocation21_spill] sm:$0xff]  ;;  %v439_v63 = vsel %vm106_vm4, %v1687_v20, %v1570_v0  ;;  %v407_v0 = vsel %vm85_vm5, %v1689_v32, %v1657_v40 }
 0x253   :  { %v375_v40 = vsel %vm64_vm6, %v1711_v12, %v1655_v36  ;;  %v342_v12 = vsel %vm43_vm7, %v335_v51, %v1605_v44 }
 0x254   :  { %698 = vmatpush.msra.mxu1 %v480_v31 }
 0x255   :  { %v563_v53 = vpop.permute.xlu0 %562 }
 0x256   :  { %v1717_v55 = vpop.permute.xlu1 %340  ;;  %699 = vmatpush.msra.mxu1 %v1318_v14  ;;  %v1955_v14 = vld [vmem:[#allocation7_spill] sm:$0xff]  ;;  %v566_v49 = vsel %vm190_vm1, %v1400_v34, %v563_v53  ;;  %v572_v45 = vsel %vm190_vm1, %v563_v53, %v1455_v25  ;;  %v1964_v34 = vld [vmem:[#allocation20_spill] sm:$0xff]  ;;  %v476_v25 = vsel %vm127_vm3, %v1634_v52, %v1416_v47  ;;  %v344_v47 = vsel %vm43_vm7, %v1356_v62, %v335_v51  ;;  %v1967_v62 = vld [vmem:[#allocation18_spill] sm:$0xff] }
 0x257   :  { %v349_v13 = vsel %vm43_vm7, %v1717_v55, %v1576_v50  ;;  %v540_v50 = vsel %vm169_vm2, %v1607_v3, %v1956_v30  ;;  %v350_v16 = vmul.f32 %v348_v22, %v1955_v14  ;;  %v420_v3 = vmul.f32 %v409_v59, %v1957_v46  ;;  %v1962_v22 = vld [vmem:[#allocation2_spill] sm:$0xff]  ;;  %v1968_v46 = vld [vmem:[#allocation17_spill] sm:$0xff] }
 0x258   :  { %700 = vmatpush.msra.mxu1 %v1954_v58  ;;  %v354_v7 = vmul.f32 %v349_v13, %v1955_v14  ;;  %v545_v43 = vmul.f32 %v540_v50, %v1958_v15  ;;  %v1963_v13 = vld [vmem:[#allocation8_spill] sm:$0xff]  ;;  %v384_v58 = vmul.f32 %v376_v6, %v1960_v56  ;;  %v576_v14 = vmul.f32 %v566_v49, %v1962_v22  ;;  %v1972_v15 = vld [vmem:[#allocation15_spill] sm:$0xff] }
 0x259   :  { %v374_v53 = vsel %vm64_vm6, %v1747_v5, %v1568_v10  ;;  %v353_v10 = vmul.f32 %v342_v12, %v1972_v15 }
 0x25a   :  { %615 = vmatpush.msra.mxu0 %v354_v7  ;;  %701 = vmatpush.msra.mxu1 %v452_v61  ;;  %v477_v61 = vsel %vm127_vm3, %v469_v19, %v1964_v34  ;;  %v577_v7 = vmul.f32 %v572_v45, %v1963_v13  ;;  %v1965_v19 = vld [vmem:[#allocation11_spill] sm:$0xff] }
 0x25b   :  { %v485_v59 = vmul.f32 %v477_v61, %v1965_v19  ;;  %v481_v50 = vmul.f32 %v476_v25, %v1965_v19 }
 0x25c   :  { %616 = vmatpush.msra.mxu0 %v350_v16  ;;  %702 = vmatpush.msra.mxu1 %v448_v38  ;;  %v1966_v38 = vld [vmem:[#allocation6_spill] sm:$0xff] }
 0x25d   :  { %617 = vmatmul.f32.vlgmr.msra.gmra.mxu0 %v1640_v28  ;;  %v352_v21 = vmul.f32 %v344_v47, %v1966_v38 }
 0x25e   :  { %739 = vmatpush.msrb.mxu0 %v549_v42  ;;  %v565_v9 = vpop.permute.xlu1 %564  ;;  %703 = vmatpush.msra.mxu1 %v420_v3 }
 0x25f   :  { %v567_v31 = vsel %vm190_vm1, %v1961_v29, %v565_v9  ;;  %v573_v37 = vsel %vm190_vm1, %v565_v9, %v1514_v48  ;;  %v513_v48 = vmul.f32 %v508_v24, %v1959_v41 }
 0x260   :  { %v580_v39 = vmul.f32 %v567_v31, %v1962_v22  ;;  %v581_v8 = vmul.f32 %v573_v37, %v1963_v13  ;;  %740 = vmatpush.msrb.mxu0 %v545_v43  ;;  %704 = vmatpush.msra.mxu1 %v416_v4 }
 0x262   :  { %741 = vmatpush.msrb.mxu0 %v517_v35  ;;  %705 = vmatpush.msra.mxu1 %v388_v18 }
 0x263   :  { %730 = vmatpush.msrb.mxu3 %v580_v39  ;;  %776 = vmatpush.msra.mxu2 %v581_v8 }
 0x264   :  { %742 = vmatpush.msrb.mxu0 %v513_v48  ;;  %706 = vmatpush.msra.mxu1 %v384_v58 }
 0x265   :  { %731 = vmatpush.msrb.mxu3 %v576_v14  ;;  %777 = vmatpush.msra.mxu2 %v577_v7 }
 0x266   :  { %743 = vmatpush.msrb.mxu0 %v485_v59  ;;  %v337_v30 = vpop.permute.xlu1 %336  ;;  %809 = vmatmul.msk.f32.vlgmr.msrb.gmra.mxu3 %vm594_vm9, %v1541_v33 }
 0x267   :  { %v345_v52 = vsel %vm43_vm7, %v1414_v26, %v337_v30  ;;  %620 = vmatmul.f32.gmra.mxu0 %v1697_v54  ;;  %811 = vmatmul.msk.f32.vlgmr.msra.gmra.mxu2 %vm594_vm9, %v1541_v33  ;;  %v438_v26 = vsel %vm106_vm4, %v1692_v1, %v1512_v2  ;;  %v1969_v33 = vld [vmem:[#allocation12_spill] sm:$0xff]  ;;  %v406_v2 = vsel %vm85_vm5, %v1707_v57, %v1550_v27  ;;  %v1970_v1 = vld [vmem:[#allocation13_spill] sm:$0xff]  ;;  %v1971_v27 = vld [vmem:[#allocation14_spill] sm:$0xff] }
 0x268   :  { %v356_v16 = vmul.f32 %v345_v52, %v1966_v38  ;;  %744 = vmatpush.msrb.mxu0 %v481_v50  ;;  %v453_v3 = vmul.f32 %v439_v63, %v1969_v33  ;;  %v449_v20 = vmul.f32 %v438_v26, %v1969_v33  ;;  %v421_v23 = vmul.f32 %v407_v0, %v1970_v1 }
 0x269   :  { %v417_v32 = vmul.f32 %v406_v2, %v1970_v1  ;;  %v389_v57 = vmul.f32 %v375_v40, %v1971_v27  ;;  %v385_v36 = vmul.f32 %v374_v53, %v1971_v27 }
 0x26a   :  { %745 = vmatpush.msrb.mxu0 %v1967_v62  ;;  %707 = vmatpush.msra.mxu1 %v356_v16 }
 0x26c   :  { %746 = vmatpush.msrb.mxu0 %v1968_v46  ;;  %708 = vmatpush.msra.mxu1 %v352_v21 }
 0x26d   :  { %709 = vmatmul.f32.vlgmr.msra.gmra.mxu1 %v1640_v28 }
 0x26e   :  { %747 = vmatpush.msrb.mxu0 %v453_v3  ;;  %810 = vmatmul.msk.f32.gmra.mxu3 %vm594_vm9, %v1671_v17 }
 0x26f   :  { %812 = vmatmul.msk.f32.gmra.mxu2 %vm594_vm9, %v1671_v17  ;;  %v343_v17 = vsel %vm43_vm7, %v337_v30, %v1717_v55  ;;  %v587_v55 = vpop.permute.xlu0 %586 }
 0x270   :  { %748 = vmatpush.msrb.mxu0 %v449_v20  ;;  %v357_v42 = vmul.f32 %v343_v17, %v1972_v15 }
 0x272   :  { %749 = vmatpush.msrb.mxu0 %v421_v23 }
 0x274   :  { %750 = vmatpush.msrb.mxu0 %v417_v32 }
 0x275   :  { %712 = vmatmul.f32.gmra.mxu1 %v1697_v54 }
 0x276   :  { %751 = vmatpush.msrb.mxu0 %v389_v57 }
 0x278   :  { %752 = vmatpush.msrb.mxu0 %v385_v36 }
 0x27a   :  { %753 = vmatpush.msrb.mxu0 %v357_v42 }
 0x27c   :  { %754 = vmatpush.msrb.mxu0 %v353_v10 }
 0x27d   :  { %755 = vmatmul.f32.vlgmr.msrb.gmra.mxu0 %v1640_v28 }
 0x285   :  { %758 = vmatmul.f32.gmra.mxu0 %v1697_v54 }
 0x299   :  { %v641_v41 = vpop.f32.mrf.mxu1 }
 0x29a   :  { %v687_v24 = vpop.f32.mrf.mxu3 }
 0x2ae   :  { %v644_v56 = vpop.f32.mrf.mxu1 }
 0x2b4   :  { %v690_v6 = vpop.f32.mrf.mxu3 }
 0x2bc   :  { %v664_v5 = vpop.f32.mrf.mxu2 }
 0x2bd   :  { %v665_v43 = vadd.f32 %v664_v5, %v587_v55 }
 0x2bf   :  { %v688_v60 = vadd.f32 %v687_v24, %v665_v43 }
 0x2c1   :  { %786 = vst [vmem:[%s1898_s6 + $0x8] sm:$0xff] %v688_v60 }
 0x2c2   :  { %v592_v11 = vpop.permute.xlu1 %591 }
 0x2c4   :  { %v667_v44 = vpop.f32.mrf.mxu2 }
 0x2c5   :  { %v668_v4 = vadd.f32 %v667_v44, %v592_v11 }
 0x2c7   :  { %v691_v9 = vadd.f32 %v690_v6, %v668_v4 }
 0x2c9   :  { %790 = vst [vmem:[%s1898_s6 + $0x28] sm:$0xff] %v691_v9 }
 0x2da   :  { %v618_v28 = vpop.f32.mrf.mxu0 }
 0x2db   :  { %v619_v54 = vadd.f32 %v618_v28, %v587_v55 }
 0x2dd   :  { %v642_v35 = vadd.f32 %v641_v41, %v619_v54 }
 0x2df   :  { %785 = vst [vmem:[%s1898_s6] sm:$0xff] %v642_v35 }
 0x2e4   :  { %v621_v18 = vpop.f32.mrf.mxu0 }
 0x2e5   :  { %v622_v49 = vadd.f32 %v621_v18, %v592_v11 }
 0x2e7   :  { %v645_v29 = vadd.f32 %v644_v56, %v622_v49 }
 0x2e9   :  { %789 = vst [vmem:[%s1898_s6 + $0x20] sm:$0xff] %v645_v29  ;;  %v733_v37 = vpop.f32.mrf.mxu3 }
 0x2ea   :  { %v710_v31 = vpop.f32.mrf.mxu1  ;;  %v779_v61 = vpop.f32.mrf.mxu2 }
 0x2eb   :  { %v711_v45 = vadd.f32 %v710_v31, %v587_v55 }
 0x2ed   :  { %v734_v22 = vadd.f32 %v733_v37, %v711_v45 }
 0x2ef   :  { %787 = vst [vmem:[%s1898_s6 + $0x10] sm:$0xff] %v734_v22 }
 0x2f1   :  { %v736_v13 = vpop.f32.mrf.mxu3 }
 0x2f2   :  { %v713_v39 = vpop.f32.mrf.mxu1  ;;  %v782_v7 = vpop.f32.mrf.mxu2 }
 0x2f3   :  { %v714_v8 = vadd.f32 %v713_v39, %v592_v11 }
 0x2f5   :  { %v737_v34 = vadd.f32 %v736_v13, %v714_v8 }
 0x2f7   :  { %791 = vst [vmem:[%s1898_s6 + $0x30] sm:$0xff] %v737_v34 }
 0x2fa   :  { %v756_v58 = vpop.f32.mrf.mxu0 }
 0x2fb   :  { %v757_v48 = vadd.f32 %v756_v58, %v587_v55 }
 0x2fd   :  { %v780_v25 = vadd.f32 %v779_v61, %v757_v48 }
 0x2ff   :  { %788 = vst [vmem:[%s1898_s6 + $0x18] sm:$0xff] %v780_v25 }
 0x302   :  { %v759_v14 = vpop.f32.mrf.mxu0 }
 0x303   :  { %v760_v51 = vadd.f32 %v759_v14, %v592_v11 }
 0x305   :  { %v783_v19 = vadd.f32 %v782_v7, %v760_v51 }
 0x307   :  { %792 = vst [vmem:[%s1898_s6 + $0x38] sm:$0xff] %v783_v19 }

</bundles_post_ra>
